<compile_context>
chip_gen: v6e
topology: v6e:2x2x1
jax: 0.10.0
libtpu: 0.0.40
codegen_flags: <defaults>
</compile_context>

<pallas_src>
import functools

import jax
import jax.numpy as jnp
from jax.experimental import pallas as pl
from jax.experimental.pallas import tpu as pltpu


def mlp_kernel(xT_ref, w12t_ref, b12_ref, w3t_ref, b3_ref, w4t_ref, b4_ref, oT_ref):
    # Transposed layout: features on sublanes, batch on lanes.
    # fused linear1+linear2 (no activation between them in the reference), + ReLU
    h = jnp.dot(w12t_ref[...], xT_ref[...],
                preferred_element_type=jnp.float32) + b12_ref[...]
    h = jnp.maximum(h, 0.0)
    # linear3 + ReLU
    h = jnp.dot(w3t_ref[...], h,
                preferred_element_type=jnp.float32) + b3_ref[...]
    h = jnp.maximum(h, 0.0)
    # linear4 (logits), lane-dense (out_dim, TB) store -- no 128-lane padding
    oT_ref[...] = (jnp.dot(w4t_ref[...], h,
                           preferred_element_type=jnp.float32)
                   + b4_ref[...]).astype(oT_ref.dtype)


def prepare_params(params, compute_dtype=jnp.float32):
    """One-time parameter prep (hoisted out of the per-call path).

    Folds linear1 into linear2 (valid because the reference forward has no
    activation between them) and stores weights transposed (out, in) /
    biases as (out, 1) for the (features, batch) kernel layout.
    """
    (w1, b1), (w2, b2), (w3, b3), (w4, b4) = params
    w12 = w1 @ w2              # (in_dim, 32)   fold done in f32
    b12 = b1 @ w2 + b2         # (1, 32)
    return (
        w12.T.astype(compute_dtype),            # (32, in_dim)
        b12.reshape(-1, 1).astype(jnp.float32),  # (32, 1)  bias/ReLU stay f32 (v5e-safe)
        w3.T.astype(compute_dtype),              # (16, 32)
        b3.reshape(-1, 1).astype(jnp.float32),   # (16, 1)
        w4.T.astype(compute_dtype),              # (out_dim, 16)
        b4.reshape(-1, 1).astype(jnp.float32),   # (out_dim, 1)
    )


def _pick_batch_tile(b_pad):
    """Largest lane tile (<=2048) dividing b_pad, with >=2 grid steps when
    the batch is big enough for v7x megacore sharding to matter."""
    if b_pad % 128 != 0:
        return b_pad                      # single full-extent tile (no padding)
    min_steps = 2 if b_pad >= 256 else 1
    for cand in (2048, 1024, 512, 256, 128):
        if cand * min_steps <= b_pad and b_pad % cand == 0:
            return cand
    return 128


def mlp_forward(x, prepared, *, force_pallas=False):
    w12t, b12, w3t, b3, w4t, b4 = prepared
    B, in_dim = x.shape
    out_dim = w4t.shape[0]
    op_dtype = w12t.dtype

    # Tiny-batch path: one grid step + launch overhead would dominate the
    # ~hundreds of FLOPs of useful work, so use the plain fused XLA chain.
    if not force_pallas and B < 128:
        xc = x.astype(op_dtype)
        h = jnp.maximum(
            jnp.dot(xc, w12t.T, preferred_element_type=jnp.float32) + b12[:, 0], 0.0)
        h = jnp.maximum(
            jnp.dot(h.astype(op_dtype), w3t.T,
                    preferred_element_type=jnp.float32) + b3[:, 0], 0.0)
        return (jnp.dot(h.astype(op_dtype), w4t.T,
                        preferred_element_type=jnp.float32) + b4[:, 0])

    # Transposed layout: (features, batch) with batch on the lane axis.
    x_t = x.T.astype(op_dtype)                     # (in_dim, B)

    if B % 128 == 0:
        b_pad = B                                  # already lane-aligned, no pad
    elif B <= 2048:
        b_pad = B                                  # single full-extent tile, no pad
    else:
        b_pad = ((B + 127) // 128) * 128           # pad by at most 127 rows
        x_t = jnp.pad(x_t, ((0, 0), (0, b_pad - B)))

    tb = _pick_batch_tile(b_pad)
    grid = (b_pad // tb,)

    def resident(arr):
        # Same block every grid step -> loaded once, kept in VMEM.
        return pl.BlockSpec(arr.shape, lambda i: (0, 0))

    out_t = pl.pallas_call(
        mlp_kernel,
        out_shape=jax.ShapeDtypeStruct((out_dim, b_pad), jnp.float32),
        grid=grid,
        in_specs=[
            pl.BlockSpec((in_dim, tb), lambda i: (0, i)),   # streamed x tile
            resident(w12t), resident(b12),
            resident(w3t), resident(b3),
            resident(w4t), resident(b4),
        ],
        out_specs=pl.BlockSpec((out_dim, tb), lambda i: (0, i)),
        compiler_params=pltpu.CompilerParams(
            dimension_semantics=("parallel",)),             # 2x TCs on v7x
    )(x_t, w12t, b12, w3t, b3, w4t, b4)

    out = out_t.T                                  # (b_pad, out_dim), lane-dense writeback
    return out[:B] if b_pad != B else out


def init_linear(key, in_dim, out_dim):
    # Deterministic init mimicking PyTorch nn.Linear uniform(-1/sqrt(in), 1/sqrt(in)).
    kw, kb = jax.random.split(key)
    bound = 1.0 / (in_dim ** 0.5)
    w = jax.random.uniform(kw, (in_dim, out_dim), jnp.float32, -bound, bound)
    b = jax.random.uniform(kb, (1, out_dim), jnp.float32, -bound, bound)
    return w, b


def reference_forward(x, params):
    # Matches the PyTorch Model.forward exactly (no activation after linear1,
    # sigmoid is defined but unused in the reference forward).
    (w1, b1), (w2, b2), (w3, b3), (w4, b4) = params
    h = x @ w1 + b1
    h = h @ w2 + b2
    h = jnp.maximum(h, 0.0)
    h = h @ w3 + b3
    h = jnp.maximum(h, 0.0)
    return h @ w4 + b4


if __name__ == "__main__":
    key = jax.random.PRNGKey(0)
    k_small, k_large, k1, k2, k3, k4 = jax.random.split(key, 6)

    input_dim, output_dim = 4, 3   # iris: 4 features -> 3 classes

    params = (
        init_linear(k1, input_dim, 32),
        init_linear(k2, 32, 32),
        init_linear(k3, 32, 16),
        init_linear(k4, 16, output_dim),
    )
    prepared_f32 = prepare_params(params, compute_dtype=jnp.float32)

    fwd_pallas = jax.jit(functools.partial(mlp_forward, force_pallas=True))
    fwd_auto = jax.jit(mlp_forward)

    # --- tiny batch (iris-scale), forced through the Pallas kernel ---
    x_small = jax.random.normal(k_small, (8, input_dim), jnp.float32)
    out_small = jax.block_until_ready(fwd_pallas(x_small, prepared_f32))
    ref_small = reference_forward(x_small, params)
    assert out_small.shape == (8, output_dim)
    assert jnp.allclose(out_small, ref_small, atol=1e-5, rtol=1e-5)

    # --- tiny batch via the size-based dispatch (XLA fallback path) ---
    out_fb = jax.block_until_ready(fwd_auto(x_small, prepared_f32))
    assert jnp.allclose(out_fb, ref_small, atol=1e-5, rtol=1e-5)

    # --- larger batch: multiple 128-lane tiles, >=2 parallel grid steps ---
    x_large = jax.random.normal(k_large, (384, input_dim), jnp.float32)
    out_large = jax.block_until_ready(fwd_auto(x_large, prepared_f32))
    ref_large = reference_forward(x_large, params)
    assert out_large.shape == (384, output_dim)
    assert jnp.allclose(out_large, ref_large, atol=1e-5, rtol=1e-5)

    # --- bf16 operands (native MXU format on v6e/v7x; accum/bias/ReLU stay f32) ---
    prepared_bf16 = prepare_params(params, compute_dtype=jnp.bfloat16)
    out_bf16 = jax.block_until_ready(fwd_auto(x_large, prepared_bf16))
    assert jnp.allclose(out_bf16, ref_large, atol=1e-1, rtol=1e-1)

    print("KERNEL_OK")
</pallas_src>

<mosaic_0001>
module attributes {stable_mosaic.version = 11 : i64} {
  func.func @mlp_kernel(%arg0: i32, %arg1: memref<4x8xf32, #tpu.memory_space<vmem>>, %arg2: memref<32x4xf32, #tpu.memory_space<vmem>>, %arg3: memref<32x1xf32, #tpu.memory_space<vmem>>, %arg4: memref<16x32xf32, #tpu.memory_space<vmem>>, %arg5: memref<16x1xf32, #tpu.memory_space<vmem>>, %arg6: memref<3x16xf32, #tpu.memory_space<vmem>>, %arg7: memref<3x1xf32, #tpu.memory_space<vmem>>, %arg8: memref<3x8xf32, #tpu.memory_space<vmem>>) attributes {dimension_semantics = [#tpu.dimension_semantics<parallel>], iteration_bounds = array<i64: 1>, scalar_prefetch = 0 : i64, scratch_operands = 0 : i64, tpu.core_type = #tpu.core_type<tc>, window_params = [{transform_indices = @transform_0, window_bounds = array<i64: 4, 8>}, {pipeline_mode = #tpu.pipeline_mode<synchronous>, transform_indices = @transform_1, window_bounds = array<i64: 32, 4>}, {pipeline_mode = #tpu.pipeline_mode<synchronous>, transform_indices = @transform_2, window_bounds = array<i64: 32, 1>}, {pipeline_mode = #tpu.pipeline_mode<synchronous>, transform_indices = @transform_3, window_bounds = array<i64: 16, 32>}, {pipeline_mode = #tpu.pipeline_mode<synchronous>, transform_indices = @transform_4, window_bounds = array<i64: 16, 1>}, {pipeline_mode = #tpu.pipeline_mode<synchronous>, transform_indices = @transform_5, window_bounds = array<i64: 3, 16>}, {pipeline_mode = #tpu.pipeline_mode<synchronous>, transform_indices = @transform_6, window_bounds = array<i64: 3, 1>}, {transform_indices = @transform_7, window_bounds = array<i64: 3, 8>}]} {
    %c0 = arith.constant 0 : index
    %c0_0 = arith.constant 0 : index
    %0 = vector.load %arg2[%c0, %c0_0] : memref<32x4xf32, #tpu.memory_space<vmem>>, vector<32x4xf32>
    %c0_1 = arith.constant 0 : index
    %c0_2 = arith.constant 0 : index
    %1 = vector.load %arg1[%c0_1, %c0_2] : memref<4x8xf32, #tpu.memory_space<vmem>>, vector<4x8xf32>
    %cst = arith.constant dense<0.000000e+00> : vector<32x8xf32>
    %2 = tpu.matmul %0, %1, %cst {dimension_numbers = #tpu.dot_dimension_numbers<[1], [0], [0], [1], [0, 0, 1, 1], [], []>} : vector<32x4xf32>, vector<4x8xf32>, vector<32x8xf32> -> vector<32x8xf32>
    %c0_3 = arith.constant 0 : index
    %c0_4 = arith.constant 0 : index
    %3 = vector.load %arg3[%c0_3, %c0_4] : memref<32x1xf32, #tpu.memory_space<vmem>>, vector<32x1xf32>
    %4 = vector.broadcast %3 : vector<32x1xf32> to vector<32x8xf32>
    %5 = arith.addf %2, %4 : vector<32x8xf32>
    %cst_5 = arith.constant 0.000000e+00 : f32
    %6 = vector.broadcast %cst_5 : f32 to vector<32x8xf32>
    %7 = arith.maximumf %5, %6 : vector<32x8xf32>
    %c0_6 = arith.constant 0 : index
    %c0_7 = arith.constant 0 : index
    %8 = vector.load %arg4[%c0_6, %c0_7] : memref<16x32xf32, #tpu.memory_space<vmem>>, vector<16x32xf32>
    %cst_8 = arith.constant dense<0.000000e+00> : vector<16x8xf32>
    %9 = tpu.matmul %8, %7, %cst_8 {dimension_numbers = #tpu.dot_dimension_numbers<[1], [0], [0], [1], [0, 0, 1, 1], [], []>} : vector<16x32xf32>, vector<32x8xf32>, vector<16x8xf32> -> vector<16x8xf32>
    %c0_9 = arith.constant 0 : index
    %c0_10 = arith.constant 0 : index
    %10 = vector.load %arg5[%c0_9, %c0_10] : memref<16x1xf32, #tpu.memory_space<vmem>>, vector<16x1xf32>
    %11 = vector.broadcast %10 : vector<16x1xf32> to vector<16x8xf32>
    %12 = arith.addf %9, %11 : vector<16x8xf32>
    %cst_11 = arith.constant 0.000000e+00 : f32
    %13 = vector.broadcast %cst_11 : f32 to vector<16x8xf32>
    %14 = arith.maximumf %12, %13 : vector<16x8xf32>
    %c0_12 = arith.constant 0 : index
    %c0_13 = arith.constant 0 : index
    %15 = vector.load %arg6[%c0_12, %c0_13] : memref<3x16xf32, #tpu.memory_space<vmem>>, vector<3x16xf32>
    %cst_14 = arith.constant dense<0.000000e+00> : vector<3x8xf32>
    %16 = tpu.matmul %15, %14, %cst_14 {dimension_numbers = #tpu.dot_dimension_numbers<[1], [0], [0], [1], [0, 0, 1, 1], [], []>} : vector<3x16xf32>, vector<16x8xf32>, vector<3x8xf32> -> vector<3x8xf32>
    %c0_15 = arith.constant 0 : index
    %c0_16 = arith.constant 0 : index
    %17 = vector.load %arg7[%c0_15, %c0_16] : memref<3x1xf32, #tpu.memory_space<vmem>>, vector<3x1xf32>
    %18 = vector.broadcast %17 : vector<3x1xf32> to vector<3x8xf32>
    %19 = arith.addf %16, %18 : vector<3x8xf32>
    %c0_17 = arith.constant 0 : index
    %c0_18 = arith.constant 0 : index
    %20 = vector.load %arg8[%c0_17, %c0_18] : memref<3x8xf32, #tpu.memory_space<vmem>>, vector<3x8xf32>
    tpu.vector_store %arg8[%c0_17, %c0_18], %19 {strides = array<i32>} : memref<3x8xf32, #tpu.memory_space<vmem>>, vector<3x8xf32>,
    return
  }
  func.func @transform_0(%arg0: i32) -> (i32, i32) {
    %c0_i32 = arith.constant 0 : i32
    %c0_i32_0 = arith.constant 0 : i32
    return %c0_i32, %arg0 : i32, i32
  }
  func.func @transform_1(%arg0: i32) -> (i32, i32) {
    %c0_i32 = arith.constant 0 : i32
    %c0_i32_0 = arith.constant 0 : i32
    %c0_i32_1 = arith.constant 0 : i32
    return %c0_i32, %c0_i32_0 : i32, i32
  }
  func.func @transform_2(%arg0: i32) -> (i32, i32) {
    %c0_i32 = arith.constant 0 : i32
    %c0_i32_0 = arith.constant 0 : i32
    %c0_i32_1 = arith.constant 0 : i32
    return %c0_i32, %c0_i32_0 : i32, i32
  }
  func.func @transform_3(%arg0: i32) -> (i32, i32) {
    %c0_i32 = arith.constant 0 : i32
    %c0_i32_0 = arith.constant 0 : i32
    %c0_i32_1 = arith.constant 0 : i32
    return %c0_i32, %c0_i32_0 : i32, i32
  }
  func.func @transform_4(%arg0: i32) -> (i32, i32) {
    %c0_i32 = arith.constant 0 : i32
    %c0_i32_0 = arith.constant 0 : i32
    %c0_i32_1 = arith.constant 0 : i32
    return %c0_i32, %c0_i32_0 : i32, i32
  }
  func.func @transform_5(%arg0: i32) -> (i32, i32) {
    %c0_i32 = arith.constant 0 : i32
    %c0_i32_0 = arith.constant 0 : i32
    %c0_i32_1 = arith.constant 0 : i32
    return %c0_i32, %c0_i32_0 : i32, i32
  }
  func.func @transform_6(%arg0: i32) -> (i32, i32) {
    %c0_i32 = arith.constant 0 : i32
    %c0_i32_0 = arith.constant 0 : i32
    %c0_i32_1 = arith.constant 0 : i32
    return %c0_i32, %c0_i32_0 : i32, i32
  }
  func.func @transform_7(%arg0: i32) -> (i32, i32) {
    %c0_i32 = arith.constant 0 : i32
    %c0_i32_0 = arith.constant 0 : i32
    return %c0_i32, %arg0 : i32, i32
  }
}

</mosaic_0001>

<bundles_post_ra>
// kernel: mlp_forward.1
= control target key start
LH: loop header
LB: loop body
LE: loop exit
PB: predicated region body
PF: predicated region fallthrough
CT: control target
= control target key end

     0   :  { %vm69_vm0 = vcmask 1043456   ;;  %vm56_vm1 = vcmask 31744   ;;  %v433_v5 = vmov 0   ;;  %s531_s0 = inlined_call_operand.vmem [shape: f32[4,8], index: 0, kind: input, shape index: {}]   ;;  %s532_s1 = inlined_call_operand.vmem [shape: f32[32,4], index: 1, kind: input, shape index: {}]   ;;  %s533_s2 = inlined_call_operand.vmem [shape: f32[32,1], index: 2, kind: input, shape index: {}]   ;;  %s534_s3 = inlined_call_operand.vmem [shape: f32[16,32], index: 3, kind: input, shape index: {}]   ;;  %s535_s4 = inlined_call_operand.vmem [shape: f32[16,1], index: 4, kind: input, shape index: {}]   ;;  %s536_s5 = inlined_call_operand.vmem [shape: f32[3,16], index: 5, kind: input, shape index: {}]   ;;  %s537_s6 = inlined_call_operand.vmem [shape: f32[3,1], index: 6, kind: input, shape index: {}]   ;;  %s538_s7 = inlined_call_operand.hbm [shape: f32[3,8], index: 7, kind: output, shape index: {}]  }
   0x1   :  { %v31_v0 = vld [vmem:[%s531_s0] sm:$0xf]  ;;  %v28_v2 = vld [vmem:[%s532_s1 + $0x8] sm:$0xff]  ;;  %v29_v3 = vld [vmem:[%s532_s1 + $0x10] sm:$0xff]  ;;  %409 = vset.pattern.permute.xlu0 %v433_v5  ;;  %410 = vset.pattern.permute.xlu1 %v433_v5 }
   0x2   :  { %v27_v1 = vld [vmem:[%s532_s1] sm:$0xff]  ;;  %379 = vmatprep.subr.msk.mxu0 %vm69_vm0, %v31_v0  ;;  %v35_v4 = vld [vmem:[%s533_s2 + $0x18] sm:$0xff]  ;;  %v33_v6 = vld [vmem:[%s533_s2 + $0x8] sm:$0xff] }
   0x3   :  { %381 = vmatprep.mubr.msk.f32.mxu0 %vm56_vm1, %v27_v1  ;;  %380 = vmatpush3.msk.msra.mxu0 %vm69_vm0, %v31_v0  ;;  %v30_v7 = vld [vmem:[%s532_s1 + $0x18] sm:$0xff]  ;;  %v34_v8 = vld [vmem:[%s533_s2 + $0x10] sm:$0xff] }
   0x4   :  { %382 = vmatmul.mubr.msk.f32.vlgmr.msra.gmra.mxu0 %vm56_vm1, %v28_v2  ;;  %53 = vperm.xlu0 %409, %v35_v4  }
   0x5   :  { %384 = vmatprep.mubr.msk.f32.mxu0 %vm56_vm1, %v29_v3 }
   0x6   :  { %12 = vsyncpa [#allocation3], 0  ;;  %43 = vperm.xlu1 %410, %v33_v6   ;;  %v32_v9 = vld [vmem:[%s533_s2] sm:$0xff]  ;;  %v165_v10 = vld [vmem:[%s535_s4 + $0x8] sm:$0xff]  ;;  %vm176_vm2 = vcmask 261120   ;;  %v434_v31 = vmov 0.0  }
   0x7   :  { %v164_v11 = vld [vmem:[%s535_s4] sm:$0xff]  ;;  %v163_v30 = vld [vmem:[%s534_s3 + $0x8] sm:$0xff]  ;;  %398 = vmatprep.subr.mxu0 %v434_v31  ;;  %vm435_vm3 = vmmov 0   ;;  %vm267_vm4 = vcmask 130048   ;;  %vm341_vm5 = vcmask 59392  }
   0x8   :  { %385 = vmatmul.mubr.msk.f32.gmra.mxu0 %vm56_vm1, %v30_v7  ;;  %48 = vperm.xlu0 %409, %v34_v8   ;;  %v261_v12 = vld [vmem:[%s537_s6] sm:$0x7] }
   0x9   :  { %v162_v13 = vld [vmem:[%s534_s3] sm:$0xff]  ;;  %402 = vmatprep.mubr.msk.f32.mxu0 %vm435_vm3, %v434_v31  ;;  %s436_s3 = smov [#allocation2]  }
   0xa   :  { %38 = vperm.xlu1 %410, %v32_v9   ;;  %395 = vmatprep.mubr.msk.f32.mxu1 %vm176_vm2, %v162_v13  ;;  %v260_v40 = vld [vmem:[%s536_s5] sm:$0x7]  ;;  %s349_s26 = sshll.u32 %s436_s3, 4  ;;  %s350_s26 = int_to_ptr.vmem [resolvable:$true] %s349_s26 }
   0xb   :  { %s411_s27 = scalar_lea.vmem %s350_s26, 64  ;;  %p416_p1 = scmp.lt.s32.totalorder %s350_s26, %s350_s26 }
   0xc   :  { %173 = vperm.xlu0 %409, %v165_v10   ;;  %p412_p0 = scmp.ne.s32.totalorder %s350_s26, %s411_s27  ;;  %p417_p2 = scmp.lt.s32.totalorder %s411_s27, %s411_s27 }
   0xe   :  { %168 = vperm.xlu1 %410, %v164_v11   ;;  %p418_p3 = por %p417_p2, %p416_p1 }
  0x10   :  { %264 = vperm.xlu0 %409, %v261_v12   ;;  %p419_p4 = pnand %p418_p3, %p412_p0 }
  0x7f   :  { %v54_v14 = vpop.permute.xlu0 %53 }
  0x81   :  { %v44_v15 = vpop.permute.xlu1 %43 }
  0x83   :  { %v49_v19 = vpop.permute.xlu0 %48 }
  0x85   :  { %v39_v21 = vpop.permute.xlu1 %38 }
  0x87   :  { %v174_v32 = vpop.permute.xlu0 %173 }
  0x89   :  { %v169_v35 = vpop.permute.xlu1 %168 }
  0x8b   :  { %v265_v41 = vpop.permute.xlu0 %264 }
  0xc4   :  { %v383_v16 = vpop.f32.mrf.mxu0 }
  0xc5   :  { %v145_v23 = vadd.f32 %v383_v16, %v44_v15 }
  0xc6   :  { %v139_v17 = vpop.f32.mrf.mxu0 }
  0xc7   :  { %v140_v26 = vadd.f32 %v139_v17, %v39_v21  ;;  %v159_v28 = vmax.f32 %v145_v23, 0.0 }
  0xc8   :  { %v386_v18 = vpop.f32.mrf.mxu0 }
  0xc9   :  { %v155_v20 = vadd.f32 %v386_v18, %v54_v14  ;;  %v158_v29 = vmax.f32 %v140_v26, 0.0 }
  0xca   :  { %v149_v22 = vpop.f32.mrf.mxu0 }
  0xcb   :  { %v161_v24 = vmax.f32 %v155_v20, 0.0  ;;  %v150_v25 = vadd.f32 %v149_v22, %v49_v19 }
  0xcd   :  { %v160_v27 = vmax.f32 %v150_v25, 0.0  ;;  %387 = vmatprep.subr.mxu1 %v161_v24 }
  0xce   :  { %388 = vmatpush3.msra.mxu1 %v161_v24 }
  0xcf   :  { %389 = vmatprep.subr.mxu1 %v160_v27 }
  0xd0   :  { %390 = vmatpush3.msra.mxu1 %v160_v27 }
  0xd1   :  { %391 = vmatprep.subr.mxu1 %v159_v28 }
  0xd2   :  { %392 = vmatpush3.msra.mxu1 %v159_v28 }
  0xd3   :  { %393 = vmatprep.subr.mxu1 %v158_v29 }
  0xd4   :  { %394 = vmatpush3.msra.mxu1 %v158_v29 }
  0xd5   :  { %396 = vmatmul.mubr.msk.f32.vlgmr.msra.gmra.mxu1 %vm176_vm2, %v163_v30 }
 0x195   :  { %v397_v33 = vpop.f32.mrf.mxu1 }
 0x196   :  { %v255_v34 = vadd.f32 %v397_v33, %v174_v32 }
 0x197   :  { %v249_v36 = vpop.f32.mrf.mxu1 }
 0x198   :  { %v259_v37 = vmax.f32 %v255_v34, 0.0  ;;  %v250_v38 = vadd.f32 %v249_v36, %v169_v35 }
 0x19a   :  { %v258_v39 = vmax.f32 %v250_v38, 0.0  ;;  %399 = vmatpush3.msra.mxu0 %v259_v37 }
 0x19b   :  { %400 = vmatprep.subr.mxu0 %v434_v31 }
 0x19c   :  { %401 = vmatpush3.msra.mxu0 %v258_v39 }
 0x19d   :  { %403 = vmatmul.mubr.msk.f32.vlgmr.msra.gmra.mxu0 %vm267_vm4, %v260_v40 }
 0x25d   :  { %v337_v42 = vpop.f32.mrf.mxu0 }
 0x25e   :  { %v338_v43 = vadd.f32 %v337_v42, %v265_v41 }
 0x25f   :  { %v404_v44 = vpop.f32.mrf.mxu0 }
 0x260   :  { %342 = vst.msk [vmem:[#allocation2] sm:$0x7] %vm341_vm5, %v338_v43 }
 0x261   :  { %422 = shalt.err (!%p419_p4)
}
 0x262   :  { %352 = dma.vmem_to_hbm [thread:$0]  %s350_s26, 64, %s538_s7, [#allocation3]  }
 0x263   :  { %431 = dma.done.wait [#allocation3], 64  }
 0x264   :  { %432 = vsyncadd [#allocation3], 4294967232 }
 0x265   :  { %356 = vsyncpa [#allocation3], 1 }

</bundles_post_ra>
